<compile_context>
chip_gen: v5e
topology: v5e:2x2
jax: 0.10.0
libtpu: 0.0.40
codegen_flags: <defaults>
</compile_context>

<pallas_src>
import functools

import jax
import jax.numpy as jnp
import numpy as np
from jax.experimental import pallas as pl
from jax.experimental.pallas import tpu as pltpu

_LANE = 128


def _round_up(x, m):
    return ((x + m - 1) // m) * m


def _multi_head_ce_partial_kernel(logits_ref, targets_ref, out_ref, *,
                                  no_of_heads, batch, block_b):
    """Per-tile, per-head partial cross-entropy sums.

    logits_ref  : (TB, C) float  -- original row-major layout, C = 2*H classes.
    targets_ref : (1, TB) int32  -- class indices (valid for every head).
    out_ref     : (1, 1, H) f32  -- per-head CE sum over this tile's valid rows.
    """
    # (TB, C) -> (C, TB): classes on sublanes, batch lane-dense for VPU/EUP.
    # Transpose in the native dtype (bf16 stays narrow), upcast to f32 after.
    logits = jnp.transpose(logits_ref[...]).astype(jnp.float32)   # (C, TB)
    tgt = targets_ref[...]                                        # (1, TB) int32
    TB = logits.shape[1]

    # 2-way row select of the target logit (targets are in {0, 1}).
    tgt_logit = jnp.where(tgt == 0, logits[0:1, :], logits[1:2, :])   # (1, TB)

    # lane-validity mask (only when B is not a multiple of the tile width)
    if batch % block_b != 0:
        lane = jax.lax.broadcasted_iota(jnp.int32, (1, TB), 1)
        valid = (lane + pl.program_id(0) * block_b) < batch           # (1, TB)
    else:
        valid = None

    # Online prefix logsumexp over the 2-class increments of each head.
    # All max / exp-sum work is element-wise on (1, TB) rows (VPU + EUP only);
    # kept online (per-prefix max) for numerical safety vs a global-max form.
    parts = []
    m = None   # running max over classes seen so far, (1, TB)
    s = None   # running sum of exp(logit - m),        (1, TB)
    for h in range(no_of_heads):
        r0 = logits[2 * h:2 * h + 1, :]                               # (1, TB)
        r1 = logits[2 * h + 1:2 * h + 2, :]                           # (1, TB)
        pair_max = jnp.maximum(r0, r1)                                # VPU
        if h == 0:
            m = pair_max
            s = jnp.exp(r0 - m) + jnp.exp(r1 - m)
        else:
            m_new = jnp.maximum(m, pair_max)
            s = (s * jnp.exp(m - m_new)
                 + jnp.exp(r0 - m_new) + jnp.exp(r1 - m_new))
            m = m_new
        per_sample = m + jnp.log(s) - tgt_logit                       # (1, TB)
        if valid is not None:
            per_sample = jnp.where(valid, per_sample, 0.0)
        parts.append(jnp.sum(per_sample, axis=1, keepdims=True))      # (1, 1)

    out_ref[...] = jnp.reshape(jnp.concatenate(parts, axis=1),
                               (1, 1, no_of_heads))


def meta_multi_head_loss(head_predictions, targets, no_of_heads, epsilon, *,
                         block_b=None):
    """Pallas equivalent of MetaMultiHeadLoss(nn.CrossEntropyLoss(), H, eps).forward.

    Returns one (H,) f32 array of modified per-head losses (instead of a Python
    list of H scalar tensors).  Targets must be valid class indices for the
    narrowest head, i.e. in {0, 1} (same silent assumption as the 2-way select).
    """
    B, C = head_predictions.shape
    C_used = 2 * no_of_heads
    assert C >= C_used, "need at least 2*no_of_heads logit columns"
    if C != C_used:
        # Rare: unused trailing logit columns; slice so the block's last dim can
        # equal the full array dim (Mosaic (8,128) block constraint).
        head_predictions = head_predictions[:, :C_used]

    # Free metadata reshape — no HBM round trip.
    targets_2d = targets.reshape(1, B).astype(jnp.int32)

    if block_b is None:
        # (TB, C_used) input blocks are lane-padded to 128 in VMEM (~TB*512 B
        # for f32), so 24576 rows => ~12 MiB per buffer (x2 double-buffered)
        # while still moving ~0.75 MiB of real data per DMA step — enough to
        # keep the ~0.35 us per-grid-step overhead hidden on v5e/v6e/v7x.
        block_b = 24576
    if B > _LANE:
        # Guarantee >= 2 tiles so the "parallel" axis shards across v7x's 2 TCs.
        block_b = min(block_b, _round_up((B + 1) // 2, _LANE))
    block_b = _round_up(block_b, _LANE)
    if block_b >= B:
        block_b = B                       # single exact tile, no masking needed
    num_tiles = pl.cdiv(B, block_b)

    partials = pl.pallas_call(
        functools.partial(_multi_head_ce_partial_kernel,
                          no_of_heads=no_of_heads, batch=B, block_b=block_b),
        out_shape=jax.ShapeDtypeStruct((num_tiles, 1, no_of_heads), jnp.float32),
        grid=(num_tiles,),
        in_specs=[
            pl.BlockSpec((block_b, C_used), lambda i: (i, 0)),
            pl.BlockSpec((1, block_b), lambda i: (0, i)),
        ],
        out_specs=pl.BlockSpec((1, 1, no_of_heads), lambda i: (i, 0, 0)),
        compiler_params=pltpu.CompilerParams(
            dimension_semantics=("parallel",),
            vmem_limit_bytes=48 * 1024 * 1024,   # fits v7x's 64 MiB VMEM
        ),
    )(head_predictions, targets_2d)

    # tiny O(num_tiles * H) finalize in plain JAX
    losses = jnp.sum(partials.reshape(num_tiles, no_of_heads), axis=0) / B  # (H,)

    # "meta" reweighting: the minimum-loss head gets (1 - eps), the rest eps
    min_idx = jnp.argmin(losses)
    delta = jnp.where(jnp.arange(no_of_heads) == min_idx,
                      1.0 - epsilon, epsilon).astype(jnp.float32)
    return delta * losses


def _reference(head_predictions, targets, no_of_heads, epsilon):
    """Pure-JAX reference mirroring the torch module (CrossEntropyLoss, mean)."""
    losses = []
    for idx in range(1, no_of_heads + 1):
        pred = head_predictions[:, :2 * idx].astype(jnp.float32)
        lse = jax.scipy.special.logsumexp(pred, axis=1)
        tl = jnp.take_along_axis(pred, targets[:, None].astype(jnp.int32),
                                 axis=1)[:, 0]
        losses.append(jnp.mean(lse - tl))
    losses = jnp.stack(losses)
    min_idx = jnp.argmin(losses)
    delta = jnp.where(jnp.arange(no_of_heads) == min_idx, 1.0 - epsilon, epsilon)
    return delta * losses


if __name__ == "__main__":
    key = jax.random.PRNGKey(0)
    no_of_heads = 4
    epsilon = 0.1

    # small single-tile case
    k1, k2, k3, k4 = jax.random.split(key, 4)
    preds_a = jax.random.normal(k1, (8, 2 * no_of_heads), dtype=jnp.float32)
    tgts_a = jax.random.randint(k2, (8,), 0, 2, dtype=jnp.int32)
    got_a = jax.block_until_ready(
        meta_multi_head_loss(preds_a, tgts_a, no_of_heads, epsilon))
    want_a = _reference(preds_a, tgts_a, no_of_heads, epsilon)
    np.testing.assert_allclose(np.asarray(got_a), np.asarray(want_a),
                               rtol=1e-4, atol=1e-4)

    # multi-tile case with a ragged last tile (exercises grid + lane masking)
    preds_b = jax.random.normal(k3, (300, 2 * no_of_heads), dtype=jnp.float32)
    tgts_b = jax.random.randint(k4, (300,), 0, 2, dtype=jnp.int32)
    got_b = jax.block_until_ready(
        meta_multi_head_loss(preds_b, tgts_b, no_of_heads, epsilon, block_b=128))
    want_b = _reference(preds_b, tgts_b, no_of_heads, epsilon)
    np.testing.assert_allclose(np.asarray(got_b), np.asarray(want_b),
                               rtol=1e-4, atol=1e-4)

    print("KERNEL_OK")
</pallas_src>

<mosaic_0001>
module attributes {stable_mosaic.version = 11 : i64} {
  func.func @_multi_head_ce_partial_kernel(%arg0: i32, %arg1: memref<8x8xf32, #tpu.memory_space<vmem>>, %arg2: memref<1x8xi32, #tpu.memory_space<vmem>>, %arg3: memref<1x1x4xf32, #tpu.memory_space<vmem>>) attributes {dimension_semantics = [#tpu.dimension_semantics<parallel>], iteration_bounds = array<i64: 1>, scalar_prefetch = 0 : i64, scratch_operands = 0 : i64, tpu.core_type = #tpu.core_type<tc>, window_params = [{transform_indices = @transform_0, window_bounds = array<i64: 8, 8>}, {transform_indices = @transform_1, window_bounds = array<i64: 1, 8>}, {transform_indices = @transform_2, window_bounds = array<i64: 1, 1, 4>}]} {
    %c0 = arith.constant 0 : index
    %c0_0 = arith.constant 0 : index
    %0 = vector.load %arg1[%c0, %c0_0] : memref<8x8xf32, #tpu.memory_space<vmem>>, vector<8x8xf32>
    %1 = tpu.transpose %0, [1, 0] : vector<8x8xf32> -> vector<8x8xf32>
    %c0_1 = arith.constant 0 : index
    %c0_2 = arith.constant 0 : index
    %2 = vector.load %arg2[%c0_1, %c0_2] : memref<1x8xi32, #tpu.memory_space<vmem>>, vector<1x8xi32>
    %c0_i32 = arith.constant 0 : i32
    %3 = vector.broadcast %c0_i32 : i32 to vector<1x8xi32>
    %4 = arith.cmpi eq, %2, %3 : vector<1x8xi32>
    %5 = vector.extract_strided_slice %1 {offsets = [0, 0], sizes = [1, 8], strides = [1, 1]} : vector<8x8xf32> to vector<1x8xf32>
    %6 = vector.extract_strided_slice %1 {offsets = [1, 0], sizes = [1, 8], strides = [1, 1]} : vector<8x8xf32> to vector<1x8xf32>
    %7 = arith.select %4, %5, %6 : vector<1x8xi1>, vector<1x8xf32>
    %8 = vector.extract_strided_slice %1 {offsets = [0, 0], sizes = [1, 8], strides = [1, 1]} : vector<8x8xf32> to vector<1x8xf32>
    %9 = vector.extract_strided_slice %1 {offsets = [1, 0], sizes = [1, 8], strides = [1, 1]} : vector<8x8xf32> to vector<1x8xf32>
    %10 = arith.maximumf %8, %9 : vector<1x8xf32>
    %11 = arith.subf %8, %10 : vector<1x8xf32>
    %12 = math.exp %11 : vector<1x8xf32>
    %13 = arith.subf %9, %10 : vector<1x8xf32>
    %14 = math.exp %13 : vector<1x8xf32>
    %15 = arith.addf %12, %14 : vector<1x8xf32>
    %16 = math.log %15 : vector<1x8xf32>
    %17 = arith.addf %10, %16 : vector<1x8xf32>
    %18 = arith.subf %17, %7 : vector<1x8xf32>
    %cst = arith.constant dense<0.000000e+00> : vector<1xf32>
    %19 = vector.multi_reduction <add>, %18, %cst [1] : vector<1x8xf32> to vector<1xf32>
    %20 = vector.shape_cast %19 : vector<1xf32> to vector<1x1xf32>
    %21 = vector.extract_strided_slice %1 {offsets = [2, 0], sizes = [1, 8], strides = [1, 1]} : vector<8x8xf32> to vector<1x8xf32>
    %22 = vector.extract_strided_slice %1 {offsets = [3, 0], sizes = [1, 8], strides = [1, 1]} : vector<8x8xf32> to vector<1x8xf32>
    %23 = arith.maximumf %21, %22 : vector<1x8xf32>
    %24 = arith.maximumf %10, %23 : vector<1x8xf32>
    %25 = arith.subf %10, %24 : vector<1x8xf32>
    %26 = math.exp %25 : vector<1x8xf32>
    %27 = arith.mulf %15, %26 : vector<1x8xf32>
    %28 = arith.subf %21, %24 : vector<1x8xf32>
    %29 = math.exp %28 : vector<1x8xf32>
    %30 = arith.addf %27, %29 : vector<1x8xf32>
    %31 = arith.subf %22, %24 : vector<1x8xf32>
    %32 = math.exp %31 : vector<1x8xf32>
    %33 = arith.addf %30, %32 : vector<1x8xf32>
    %34 = math.log %33 : vector<1x8xf32>
    %35 = arith.addf %24, %34 : vector<1x8xf32>
    %36 = arith.subf %35, %7 : vector<1x8xf32>
    %cst_3 = arith.constant dense<0.000000e+00> : vector<1xf32>
    %37 = vector.multi_reduction <add>, %36, %cst_3 [1] : vector<1x8xf32> to vector<1xf32>
    %38 = vector.shape_cast %37 : vector<1xf32> to vector<1x1xf32>
    %39 = vector.extract_strided_slice %1 {offsets = [4, 0], sizes = [1, 8], strides = [1, 1]} : vector<8x8xf32> to vector<1x8xf32>
    %40 = vector.extract_strided_slice %1 {offsets = [5, 0], sizes = [1, 8], strides = [1, 1]} : vector<8x8xf32> to vector<1x8xf32>
    %41 = arith.maximumf %39, %40 : vector<1x8xf32>
    %42 = arith.maximumf %24, %41 : vector<1x8xf32>
    %43 = arith.subf %24, %42 : vector<1x8xf32>
    %44 = math.exp %43 : vector<1x8xf32>
    %45 = arith.mulf %33, %44 : vector<1x8xf32>
    %46 = arith.subf %39, %42 : vector<1x8xf32>
    %47 = math.exp %46 : vector<1x8xf32>
    %48 = arith.addf %45, %47 : vector<1x8xf32>
    %49 = arith.subf %40, %42 : vector<1x8xf32>
    %50 = math.exp %49 : vector<1x8xf32>
    %51 = arith.addf %48, %50 : vector<1x8xf32>
    %52 = math.log %51 : vector<1x8xf32>
    %53 = arith.addf %42, %52 : vector<1x8xf32>
    %54 = arith.subf %53, %7 : vector<1x8xf32>
    %cst_4 = arith.constant dense<0.000000e+00> : vector<1xf32>
    %55 = vector.multi_reduction <add>, %54, %cst_4 [1] : vector<1x8xf32> to vector<1xf32>
    %56 = vector.shape_cast %55 : vector<1xf32> to vector<1x1xf32>
    %57 = vector.extract_strided_slice %1 {offsets = [6, 0], sizes = [1, 8], strides = [1, 1]} : vector<8x8xf32> to vector<1x8xf32>
    %58 = vector.extract_strided_slice %1 {offsets = [7, 0], sizes = [1, 8], strides = [1, 1]} : vector<8x8xf32> to vector<1x8xf32>
    %59 = arith.maximumf %57, %58 : vector<1x8xf32>
    %60 = arith.maximumf %42, %59 : vector<1x8xf32>
    %61 = arith.subf %42, %60 : vector<1x8xf32>
    %62 = math.exp %61 : vector<1x8xf32>
    %63 = arith.mulf %51, %62 : vector<1x8xf32>
    %64 = arith.subf %57, %60 : vector<1x8xf32>
    %65 = math.exp %64 : vector<1x8xf32>
    %66 = arith.addf %63, %65 : vector<1x8xf32>
    %67 = arith.subf %58, %60 : vector<1x8xf32>
    %68 = math.exp %67 : vector<1x8xf32>
    %69 = arith.addf %66, %68 : vector<1x8xf32>
    %70 = math.log %69 : vector<1x8xf32>
    %71 = arith.addf %60, %70 : vector<1x8xf32>
    %72 = arith.subf %71, %7 : vector<1x8xf32>
    %cst_5 = arith.constant dense<0.000000e+00> : vector<1xf32>
    %73 = vector.multi_reduction <add>, %72, %cst_5 [1] : vector<1x8xf32> to vector<1xf32>
    %74 = vector.shape_cast %73 : vector<1xf32> to vector<1x1xf32>
    %75 = tpu.concatenate %20, %38, %56, %74 in 1 : vector<1x1xf32>, vector<1x1xf32>, vector<1x1xf32>, vector<1x1xf32> -> vector<1x4xf32>
    %76 = vector.shape_cast %75 : vector<1x4xf32> to vector<1x1x4xf32>
    %c0_6 = arith.constant 0 : index
    %c0_7 = arith.constant 0 : index
    %c0_8 = arith.constant 0 : index
    %77 = vector.load %arg3[%c0_6, %c0_7, %c0_8] : memref<1x1x4xf32, #tpu.memory_space<vmem>>, vector<1x1x4xf32>
    tpu.vector_store %arg3[%c0_6, %c0_7, %c0_8], %76 {strides = array<i32>} : memref<1x1x4xf32, #tpu.memory_space<vmem>>, vector<1x1x4xf32>,
    return
  }
  func.func @transform_0(%arg0: i32) -> (i32, i32) {
    %c0_i32 = arith.constant 0 : i32
    %c0_i32_0 = arith.constant 0 : i32
    return %arg0, %c0_i32 : i32, i32
  }
  func.func @transform_1(%arg0: i32) -> (i32, i32) {
    %c0_i32 = arith.constant 0 : i32
    %c0_i32_0 = arith.constant 0 : i32
    return %c0_i32, %arg0 : i32, i32
  }
  func.func @transform_2(%arg0: i32) -> (i32, i32, i32) {
    %c0_i32 = arith.constant 0 : i32
    %c0_i32_0 = arith.constant 0 : i32
    %c0_i32_1 = arith.constant 0 : i32
    return %arg0, %c0_i32, %c0_i32_0 : i32, i32, i32
  }
}

</mosaic_0001>

<bundles_post_ra>
// kernel: tpu_custom_call.1
= control target key start
LH: loop header
LB: loop body
LE: loop exit
PB: predicated region body
PF: predicated region fallthrough
CT: control target
= control target key end

     0   :  { %7 = vsyncpa [#allocation3], 0  ;;  %s419_s0 = inlined_call_operand.hbm [shape: f32[8,8], index: 0, kind: input, shape index: {}]   ;;  %s420_s1 = inlined_call_operand.hbm [shape: s32[1,8], index: 1, kind: input, shape index: {}]   ;;  %s421_s2 = inlined_call_operand.hbm [shape: f32[1,1,4], index: 2, kind: output, shape index: {}]  }
   0x1   :  { %8 = vsyncpa [#allocation6], 0 }
   0x2   :  { %9 = vsyncpa [#allocation4], 0  ;;  %s15_s11 = sshll.u32 %s419_s0, 4  ;;  %s342_s12 = smov [#allocation2]   ;;  %s16_s11 = int_to_ptr.hbm [resolvable:$true] %s15_s11 }
   0x3   :  { %s17_s13 = sshll.u32 %s342_s12, 4  ;;  %s26_s16 = sshll.u32 %s420_s1, 4  ;;  %s18_s13 = int_to_ptr.vmem [resolvable:$true] %s17_s13  ;;  %s27_s16 = int_to_ptr.hbm [resolvable:$true] %s26_s16 }
   0x4   :  { %20 = dma.hbm_to_vmem [thread:$0]  %s16_s11, 128, %s18_s13, [#allocation3]  }
   0x5   :  { %s343_s17 = smov [#allocation5]  }
   0x6   :  { %s28_s18 = sshll.u32 %s343_s17, 4  ;;  %s29_s18 = int_to_ptr.vmem [resolvable:$true] %s28_s18 }
   0x7   :  { %31 = dma.hbm_to_vmem [thread:$0]  %s27_s16, 16, %s29_s18, [#allocation6]  }
   0x8   :  { %336 = dma.done.wait [#allocation3], 128  }
   0x9   :  { %337 = vsyncadd [#allocation3], 4294967168 }
   0xa   :  { %338 = dma.done.wait [#allocation6], 16  }
   0xb   :  { %339 = vsyncadd [#allocation6], 4294967280  ;;  %v40_v0 = vld [vmem:[#allocation2] sm:$0xff]  ;;  %v73_v49 = vld [vmem:[#allocation5] sm:$0x1]  ;;  %vm101_vm1 = vcmask 57344  }
   0xc   :  { %41 = vxpose.xlu0.b32.start.end [1/1] (short) (narrow) %v40_v0, 8  ;;  %vm74_vm0 = vcmp.eq.s32.totalorder %v73_v49, 0  ;;  %vm204_vm2 = vcmask 7168   ;;  %vm206_vm3 = vcmask 15360   ;;  %s344_s0 = smov [#allocation7]   ;;  %s219_s21 = sshll.u32 %s421_s2, 4  ;;  %s220_s21 = int_to_ptr.hbm [resolvable:$true] %s219_s21 }
   0xd   :  { %s217_s1 = sshll.u32 %s344_s0, 4  ;;  %vm208_vm4 = vcmask 23552   ;;  %vm210_vm5 = vcmask 24576   ;;  %s218_s1 = int_to_ptr.vmem [resolvable:$true] %s217_s1 }
  0xb0   :  { %v366_v1 = vpop.trf.xlu0 }
  0xb1   :  { %76 = vst [vmem:[#allocation1] sm:$0xff] %v366_v1  ;;  %v81_v2 = vrot.slane %v366_v1, 1 }
  0xb3   :  { %v371_v3 = vmax.f32 %v366_v1, %v81_v2 }
  0xb5   :  { %v84_v4 = vsub.f32 %v366_v1, %v371_v3  ;;  %v88_v5 = vrot.slane %v371_v3, 7  ;;  %v105_v6 = vrot.slane %v371_v3, 2  ;;  %v138_v9 = vrot.slane %v371_v3, 4 }
  0xb6   :  { %v171_v17 = vrot.slane %v371_v3, 6 }
  0xb7   :  { %v90_v7 = vsub.f32 %v366_v1, %v88_v5  ;;  %v379_v8 = vmax.f32 %v371_v3, %v105_v6  ;;  %v85_v10 = vmul.f32 1.442695, %v84_v4 }
  0xb8   :  { %v78_v56 = vld [vmem:[#allocation1 + $0x1] ss:$9 sm:$0xff] }
  0xb9   :  { %v91_v11 = vmul.f32 1.442695, %v90_v7  ;;  %v108_v12 = vsub.f32 %v371_v3, %v379_v8  ;;  %v113_v13 = vrot.slane %v379_v8, 6  ;;  %v122_v14 = vrot.slane %v379_v8, 5 }
  0xba   :  { %v387_v15 = vmax.f32 %v379_v8, %v138_v9  ;;  %v80_v0 = vsel %vm74_vm0, %v366_v1, %v78_v56 }
  0xbb   :  { %234 = vpow2.f32 %v91_v11  ;;  %v109_v16 = vmul.f32 1.442695, %v108_v12  ;;  %v115_v18 = vsub.f32 %v366_v1, %v113_v13  ;;  %v124_v19 = vsub.f32 %v366_v1, %v122_v14 }
  0xbc   :  { %v141_v20 = vsub.f32 %v379_v8, %v387_v15  ;;  %v146_v21 = vrot.slane %v387_v15, 4  ;;  %236 = vpow2.f32 %v85_v10  ;;  %v155_v22 = vrot.slane %v387_v15, 3 }
  0xbd   :  { %v397_v23 = vmax.f32 %v387_v15, %v171_v17  ;;  %v116_v24 = vmul.f32 1.442695, %v115_v18  ;;  %v125_v25 = vmul.f32 1.442695, %v124_v19  ;;  %238 = vpow2.f32 %v109_v16 }
  0xbe   :  { %v148_v26 = vsub.f32 %v366_v1, %v146_v21  ;;  %v142_v27 = vmul.f32 1.442695, %v141_v20  ;;  %v157_v28 = vsub.f32 %v366_v1, %v155_v22 }
  0xbf   :  { %v179_v29 = vrot.slane %v397_v23, 2  ;;  %240 = vpow2.f32 %v116_v24  ;;  %v188_v31 = vrot.slane %v397_v23, 1  ;;  %v174_v37 = vsub.f32 %v387_v15, %v397_v23 }
  0xc0   :  { %v149_v30 = vmul.f32 1.442695, %v148_v26  ;;  %242 = vpow2.f32 %v125_v25  ;;  %v158_v33 = vmul.f32 1.442695, %v157_v28 }
  0xc1   :  { %v235_v32 = vpop.eup %234  ;;  %v181_v35 = vsub.f32 %v366_v1, %v179_v29  ;;  %244 = vpow2.f32 %v142_v27  ;;  %v190_v39 = vsub.f32 %v366_v1, %v188_v31  ;;  %v175_v46 = vmul.f32 1.442695, %v174_v37 }
  0xc2   :  { %v94_v34 = vrot.slane %v235_v32, 1  ;;  %v237_v36 = vpop.eup %236  ;;  %246 = vpow2.f32 %v149_v30 }
  0xc3   :  { %v239_v40 = vpop.eup %238  ;;  %248 = vpow2.f32 %v158_v33  ;;  %v182_v43 = vmul.f32 1.442695, %v181_v35  ;;  %v191_v47 = vmul.f32 1.442695, %v190_v39 }
  0xc4   :  { %v96_v38 = vadd.f32 %v237_v36, %v94_v34 }
  0xc5   :  { %v241_v41 = vpop.eup %240 }
  0xc6   :  { %250 = vlog2.f32 %v96_v38  ;;  %v111_v42 = vmul.f32 %v239_v40, %v96_v38  ;;  %v243_v44 = vpop.eup %242  ;;  %v119_v45 = vrot.slane %v241_v41, 2 }
  0xc7   :  { %v245_v48 = vpop.eup %244  ;;  %v128_v51 = vrot.slane %v243_v44, 3  ;;  %252 = vpow2.f32 %v182_v43 }
  0xc8   :  { %v121_v50 = vadd.f32 %v119_v45, %v111_v42  ;;  %v247_v52 = vpop.eup %246  ;;  %254 = vpow2.f32 %v175_v46 }
  0xc9   :  { %v249_v53 = vpop.eup %248  ;;  %256 = vpow2.f32 %v191_v47  ;;  %v152_v59 = vrot.slane %v247_v52, 4 }
  0xca   :  { %v130_v54 = vadd.f32 %v128_v51, %v121_v50  ;;  %v161_v62 = vrot.slane %v249_v53, 5 }
  0xcc   :  { %v251_v55 = vpop.eup %250  ;;  %258 = vlog2.f32 %v130_v54  ;;  %v144_v58 = vmul.f32 %v245_v48, %v130_v54 }
  0xcd   :  { %v98_v57 = vmul.f32 0.6931472, %v251_v55  ;;  %v253_v63 = vpop.eup %252 }
  0xce   :  { %v154_v61 = vadd.f32 %v152_v59, %v144_v58  ;;  %v255_v2 = vpop.eup %254  ;;  %v185_v11 = vrot.slane %v253_v63, 6 }
  0xcf   :  { %v99_v60 = vadd.f32 %v98_v57, %v371_v3  ;;  %v257_v6 = vpop.eup %256 }
  0xd0   :  { %v163_v5 = vadd.f32 %v161_v62, %v154_v61  ;;  %v194_v3 = vrot.slane %v257_v6, 7 }
  0xd1   :  { %v100_v4 = vsub.f32 %v99_v60, %v80_v0 }
  0xd2   :  { %v259_v7 = vpop.eup %258  ;;  %260 = vlog2.f32 %v163_v5  ;;  %v177_v10 = vmul.f32 %v255_v2, %v163_v5 }
  0xd3   :  { %v102_v9 = vsel %vm101_vm1, %v100_v4, 0.0  ;;  %v132_v12 = vmul.f32 0.6931472, %v259_v7 }
  0xd4   :  { %103 = vadd.xlane.f32.xlu0 %v102_v9  ;;  %v187_v13 = vadd.f32 %v185_v11, %v177_v10 }
  0xd5   :  { %v133_v14 = vadd.f32 %v132_v12, %v379_v8 }
  0xd6   :  { %v196_v16 = vadd.f32 %v194_v3, %v187_v13 }
  0xd7   :  { %v134_v17 = vsub.f32 %v133_v14, %v80_v0 }
  0xd8   :  { %v261_v1 = vpop.eup %260  ;;  %262 = vlog2.f32 %v196_v16 }
  0xd9   :  { %v135_v18 = vsel %vm101_vm1, %v134_v17, 0.0  ;;  %v165_v19 = vmul.f32 0.6931472, %v261_v1 }
  0xda   :  { %136 = vadd.xlane.f32.xlu1 %v135_v18 }
  0xdb   :  { %v166_v20 = vadd.f32 %v165_v19, %v387_v15 }
  0xdd   :  { %v167_v21 = vsub.f32 %v166_v20, %v80_v0 }
  0xde   :  { %v263_v22 = vpop.eup %262 }
  0xdf   :  { %v198_v24 = vmul.f32 0.6931472, %v263_v22  ;;  %v168_v25 = vsel %vm101_vm1, %v167_v21, 0.0 }
  0xe1   :  { %v199_v26 = vadd.f32 %v198_v24, %v397_v23 }
  0xe2   :  { %169 = vadd.xlane.f32.xlu1 %v168_v25 }
  0xe3   :  { %v200_v27 = vsub.f32 %v199_v26, %v80_v0 }
  0xe5   :  { %v201_v8 = vsel %vm101_vm1, %v200_v27, 0.0 }
  0xe6   :  { %202 = vadd.xlane.f32.xlu2 %v201_v8 }
 0x147   :  { %v104_v15 = vpop.xlane.xlu0 %103 }
 0x14d   :  { %v137_v28 = vpop.xlane.xlu1 %136 }
 0x14e   :  { %v205_v30 = vsel %vm204_vm2, %v104_v15, %v137_v28 }
 0x155   :  { %v170_v29 = vpop.xlane.xlu1 %169 }
 0x156   :  { %v207_v23 = vsel %vm206_vm3, %v205_v30, %v170_v29 }
 0x159   :  { %v203_v31 = vpop.xlane.xlu2 %202 }
 0x15a   :  { %v209_v32 = vsel %vm208_vm4, %v207_v23, %v203_v31 }
 0x15b   :  { %211 = vst.msk [vmem:[#allocation7] sm:$0x1] %vm210_vm5, %v209_v32 }
 0x15c   :  { %222 = dma.vmem_to_hbm [thread:$0]  %s218_s1, 16, %s220_s21, [#allocation4]  }
 0x15d   :  { %340 = dma.done.wait [#allocation4], 16  }
 0x15e   :  { %341 = vsyncadd [#allocation4], 4294967280 }
 0x15f   :  { %227 = vsyncpa [#allocation3], 1 }
 0x160   :  { %228 = vsyncpa [#allocation6], 1 }
 0x161   :  { %229 = vsyncpa [#allocation4], 1 }

</bundles_post_ra>
